<compile_context>
chip_gen: v5e
topology: v5e:2x2
jax: 0.10.0
libtpu: 0.0.40
codegen_flags: <defaults>
</compile_context>

<pallas_src>
import jax
import jax.numpy as jnp
from jax.experimental import pallas as pl
from jax.experimental.pallas import tpu as pltpu


def _cdiv(a, b):
    return -(-a // b)


def _round_up(x, m):
    return _cdiv(x, m) * m


def _vmem_capacity_bytes():
    try:
        info = pltpu.get_tpu_info()
        cap = getattr(info, "vmem_capacity_bytes", None)
        if cap:
            return int(cap)
    except Exception:
        pass
    return 64 * 1024 * 1024  # conservative default (v7x per-TensorCore VMEM)


def si_sdr_loss(preds, target):
    """Pallas implementation of SISDRLoss.forward. preds/target: (B, 1, T)."""
    B, S, T = preds.shape
    assert S == 1, "the reference module's broadcast assumes a singleton source dim"

    p = preds.reshape(B, T)
    t = target.reshape(B, T)
    itemsize = max(jnp.dtype(p.dtype).itemsize, jnp.dtype(t.dtype).itemsize)

    # ---- VMEM-capacity-aware block sizing -----------------------------------
    vmem_cap = _vmem_capacity_bytes()
    vmem_limit = min((vmem_cap * 3) // 4, 100 * 1024 * 1024)
    ROW_CAP = 4096  # keeps the (tb, 1) accumulators / resident output buffers small
    scratch_allow = 5 * (ROW_CAP // 8) * 4096     # 3 accumulators + 2 output buffers
    usable = max(8 * 1024 * 1024, vmem_limit - scratch_allow - 4 * 1024 * 1024)
    # 2 inputs x 2 pipeline buffers share `usable`; a single block is capped at 16 MiB.
    block_cap = min(usable // 4, 16 * 1024 * 1024)

    # Time (lane) axis: a single full-extent block when 8 rows of it fit,
    # otherwise tile with a multiple-of-128 block + running accumulators.
    if 8 * itemsize * T <= block_cap:
        tblk = T
    else:
        tblk = max(128, (block_cap // (8 * itemsize) // 128) * 128)
    g_time = _cdiv(T, tblk)
    need_mask = (g_time > 1) and (T % tblk != 0)

    # Batch (sublane) axis: largest multiple of 8 that fits the block budget.
    tb = (block_cap // (itemsize * tblk) // 8) * 8
    tb = max(8, min(tb, ROW_CAP))
    if tb >= B:
        tb = B                                   # full-dim block, never ragged
        if B >= 16:                              # keep >= 2 blocks for v7x megacore
            tb = max(8, _round_up(_cdiv(B, 2), 8))
    g_batch = _cdiv(B, tb)

    def kernel(p_ref, t_ref, o_ref, dot_acc, tt_acc, pp_acc):
        j = pl.program_id(1)

        @pl.when(j == 0)
        def _init():
            dot_acc[...] = jnp.zeros_like(dot_acc)
            tt_acc[...] = jnp.zeros_like(tt_acc)
            pp_acc[...] = jnp.zeros_like(pp_acc)

        pv = p_ref[...].astype(jnp.float32)
        tv = t_ref[...].astype(jnp.float32)
        if need_mask:
            # Ragged last time block: zero out-of-range lanes before reducing.
            lane = jax.lax.broadcasted_iota(jnp.int32, pv.shape, 1)
            valid = (j * tblk + lane) < T
            pv = jnp.where(valid, pv, 0.0)
            tv = jnp.where(valid, tv, 0.0)

        dot_acc[...] += jnp.sum(pv * tv, axis=-1, keepdims=True)   # <p, t>
        tt_acc[...] += jnp.sum(tv * tv, axis=-1, keepdims=True)    # ||t||^2
        pp_acc[...] += jnp.sum(pv * pv, axis=-1, keepdims=True)    # ||p||^2

        @pl.when(j == pl.num_programs(1) - 1)
        def _finalize():
            dot = dot_acc[...]
            ss = dot * dot / tt_acc[...]          # ||signal||^2 = <p,t>^2 / ||t||^2
            dd = pp_acc[...] - ss                 # ||distortion||^2 (signal ⟂ distortion)
            # log10(||signal||) - log10(||distortion||) = 0.5*(log10(ss) - log10(dd))
            o_ref[...] = 0.5 * (jnp.log10(ss) - jnp.log10(dd))

    per_row = pl.pallas_call(
        kernel,
        out_shape=jax.ShapeDtypeStruct((B, 1), jnp.float32),
        grid=(g_batch, g_time),
        in_specs=[
            pl.BlockSpec((tb, tblk), lambda i, j: (i, j)),
            pl.BlockSpec((tb, tblk), lambda i, j: (i, j)),
        ],
        out_specs=pl.BlockSpec((tb, 1), lambda i, j: (i, 0)),
        scratch_shapes=[pltpu.VMEM((tb, 1), jnp.float32)] * 3,
        compiler_params=pltpu.CompilerParams(
            dimension_semantics=("parallel", "arbitrary"),
            vmem_limit_bytes=int(vmem_limit),
        ),
    )(p, t)

    # loss = -20 * mean over the B rows (final tiny reduction done in JAX).
    return (-20.0 / B) * jnp.sum(per_row)


def si_sdr_loss_ref(preds, target):
    """Pure-JAX reference mirroring the PyTorch forward exactly."""
    dot_prod = jnp.matmul(preds, jnp.swapaxes(target, -1, -2))      # (B, 1, 1)
    t_norm = jnp.linalg.norm(target, axis=-1)[:, None]              # (B, 1, 1)
    signal = dot_prod * target / t_norm ** 2                        # (B, 1, T)
    distortion = signal - preds
    return -20.0 * jnp.mean(
        jnp.log10(jnp.linalg.norm(signal, axis=-1))
        - jnp.log10(jnp.linalg.norm(distortion, axis=-1))
    )


if __name__ == "__main__":
    key = jax.random.PRNGKey(0)
    kp, kt = jax.random.split(key)

    B, T = 4, 256
    preds = jax.random.normal(kp, (B, 1, T), dtype=jnp.float32)
    target = jax.random.normal(kt, (B, 1, T), dtype=jnp.float32)

    loss = si_sdr_loss(preds, target)
    loss = jax.block_until_ready(loss)

    loss_ref = si_sdr_loss_ref(preds, target)
    assert jnp.allclose(loss, loss_ref, rtol=1e-4, atol=1e-5), (loss, loss_ref)

    print("KERNEL_OK")
</pallas_src>

<mosaic_0001>
module attributes {stable_mosaic.version = 11 : i64} {
  func.func @kernel(%arg0: i32, %arg1: i32, %arg2: memref<4x256xf32, #tpu.memory_space<vmem>>, %arg3: memref<4x256xf32, #tpu.memory_space<vmem>>, %arg4: memref<4x1xf32, #tpu.memory_space<vmem>>, %arg5: memref<4x1xf32, #tpu.memory_space<vmem>>, %arg6: memref<4x1xf32, #tpu.memory_space<vmem>>, %arg7: memref<4x1xf32, #tpu.memory_space<vmem>>) attributes {dimension_semantics = [#tpu.dimension_semantics<parallel>, #tpu.dimension_semantics<arbitrary>], iteration_bounds = array<i64: 1, 1>, scalar_prefetch = 0 : i64, scratch_operands = 3 : i64, tpu.core_type = #tpu.core_type<tc>, window_params = [{transform_indices = @transform_0, window_bounds = array<i64: 4, 256>}, {transform_indices = @transform_1, window_bounds = array<i64: 4, 256>}, {transform_indices = @transform_2, window_bounds = array<i64: 4, 1>}]} {
    %c0_i32 = arith.constant 0 : i32
    %0 = arith.cmpi eq, %arg1, %c0_i32 : i32
    %1 = arith.extui %0 : i1 to i32
    %c0_i32_0 = arith.constant 0 : i32
    %2 = arith.cmpi ne, %1, %c0_i32_0 : i32
    scf.if %2 {
      %cst_20 = arith.constant 0.000000e+00 : f32
      %26 = vector.broadcast %cst_20 : f32 to vector<4x1xf32>
      %c0_21 = arith.constant 0 : index
      %c0_22 = arith.constant 0 : index
      %27 = vector.load %arg5[%c0_21, %c0_22] : memref<4x1xf32, #tpu.memory_space<vmem>>, vector<4x1xf32>
      tpu.vector_store %arg5[%c0_21, %c0_22], %26 {strides = array<i32>} : memref<4x1xf32, #tpu.memory_space<vmem>>, vector<4x1xf32>,
      %cst_23 = arith.constant 0.000000e+00 : f32
      %28 = vector.broadcast %cst_23 : f32 to vector<4x1xf32>
      %c0_24 = arith.constant 0 : index
      %c0_25 = arith.constant 0 : index
      %29 = vector.load %arg6[%c0_24, %c0_25] : memref<4x1xf32, #tpu.memory_space<vmem>>, vector<4x1xf32>
      tpu.vector_store %arg6[%c0_24, %c0_25], %28 {strides = array<i32>} : memref<4x1xf32, #tpu.memory_space<vmem>>, vector<4x1xf32>,
      %cst_26 = arith.constant 0.000000e+00 : f32
      %30 = vector.broadcast %cst_26 : f32 to vector<4x1xf32>
      %c0_27 = arith.constant 0 : index
      %c0_28 = arith.constant 0 : index
      %31 = vector.load %arg7[%c0_27, %c0_28] : memref<4x1xf32, #tpu.memory_space<vmem>>, vector<4x1xf32>
      tpu.vector_store %arg7[%c0_27, %c0_28], %30 {strides = array<i32>} : memref<4x1xf32, #tpu.memory_space<vmem>>, vector<4x1xf32>,
    } else {
    }
    %c0 = arith.constant 0 : index
    %c0_1 = arith.constant 0 : index
    %3 = vector.load %arg2[%c0, %c0_1] : memref<4x256xf32, #tpu.memory_space<vmem>>, vector<4x256xf32>
    %c0_2 = arith.constant 0 : index
    %c0_3 = arith.constant 0 : index
    %4 = vector.load %arg3[%c0_2, %c0_3] : memref<4x256xf32, #tpu.memory_space<vmem>>, vector<4x256xf32>
    %c0_4 = arith.constant 0 : index
    %c0_5 = arith.constant 0 : index
    %5 = vector.load %arg5[%c0_4, %c0_5] : memref<4x1xf32, #tpu.memory_space<vmem>>, vector<4x1xf32>
    %6 = arith.mulf %3, %4 : vector<4x256xf32>
    %cst = arith.constant dense<0.000000e+00> : vector<4xf32>
    %7 = vector.multi_reduction <add>, %6, %cst [1] : vector<4x256xf32> to vector<4xf32>
    %8 = vector.shape_cast %7 : vector<4xf32> to vector<4x1xf32>
    %9 = arith.addf %5, %8 : vector<4x1xf32>
    %c0_6 = arith.constant 0 : index
    %c0_7 = arith.constant 0 : index
    %10 = vector.load %arg5[%c0_6, %c0_7] : memref<4x1xf32, #tpu.memory_space<vmem>>, vector<4x1xf32>
    tpu.vector_store %arg5[%c0_6, %c0_7], %9 {strides = array<i32>} : memref<4x1xf32, #tpu.memory_space<vmem>>, vector<4x1xf32>,
    %c0_8 = arith.constant 0 : index
    %c0_9 = arith.constant 0 : index
    %11 = vector.load %arg6[%c0_8, %c0_9] : memref<4x1xf32, #tpu.memory_space<vmem>>, vector<4x1xf32>
    %12 = arith.mulf %4, %4 : vector<4x256xf32>
    %cst_10 = arith.constant dense<0.000000e+00> : vector<4xf32>
    %13 = vector.multi_reduction <add>, %12, %cst_10 [1] : vector<4x256xf32> to vector<4xf32>
    %14 = vector.shape_cast %13 : vector<4xf32> to vector<4x1xf32>
    %15 = arith.addf %11, %14 : vector<4x1xf32>
    %c0_11 = arith.constant 0 : index
    %c0_12 = arith.constant 0 : index
    %16 = vector.load %arg6[%c0_11, %c0_12] : memref<4x1xf32, #tpu.memory_space<vmem>>, vector<4x1xf32>
    tpu.vector_store %arg6[%c0_11, %c0_12], %15 {strides = array<i32>} : memref<4x1xf32, #tpu.memory_space<vmem>>, vector<4x1xf32>,
    %c0_13 = arith.constant 0 : index
    %c0_14 = arith.constant 0 : index
    %17 = vector.load %arg7[%c0_13, %c0_14] : memref<4x1xf32, #tpu.memory_space<vmem>>, vector<4x1xf32>
    %18 = arith.mulf %3, %3 : vector<4x256xf32>
    %cst_15 = arith.constant dense<0.000000e+00> : vector<4xf32>
    %19 = vector.multi_reduction <add>, %18, %cst_15 [1] : vector<4x256xf32> to vector<4xf32>
    %20 = vector.shape_cast %19 : vector<4xf32> to vector<4x1xf32>
    %21 = arith.addf %17, %20 : vector<4x1xf32>
    %c0_16 = arith.constant 0 : index
    %c0_17 = arith.constant 0 : index
    %22 = vector.load %arg7[%c0_16, %c0_17] : memref<4x1xf32, #tpu.memory_space<vmem>>, vector<4x1xf32>
    tpu.vector_store %arg7[%c0_16, %c0_17], %21 {strides = array<i32>} : memref<4x1xf32, #tpu.memory_space<vmem>>, vector<4x1xf32>,
    %c0_i32_18 = arith.constant 0 : i32
    %23 = arith.cmpi eq, %arg1, %c0_i32_18 : i32
    %24 = arith.extui %23 : i1 to i32
    %c0_i32_19 = arith.constant 0 : i32
    %25 = arith.cmpi ne, %24, %c0_i32_19 : i32
    scf.if %25 {
      %c0_20 = arith.constant 0 : index
      %c0_21 = arith.constant 0 : index
      %26 = vector.load %arg5[%c0_20, %c0_21] : memref<4x1xf32, #tpu.memory_space<vmem>>, vector<4x1xf32>
      %27 = arith.mulf %26, %26 : vector<4x1xf32>
      %c0_22 = arith.constant 0 : index
      %c0_23 = arith.constant 0 : index
      %28 = vector.load %arg6[%c0_22, %c0_23] : memref<4x1xf32, #tpu.memory_space<vmem>>, vector<4x1xf32>
      %29 = arith.divf %27, %28 : vector<4x1xf32>
      %c0_24 = arith.constant 0 : index
      %c0_25 = arith.constant 0 : index
      %30 = vector.load %arg7[%c0_24, %c0_25] : memref<4x1xf32, #tpu.memory_space<vmem>>, vector<4x1xf32>
      %31 = arith.subf %30, %29 : vector<4x1xf32>
      %32 = math.log %29 : vector<4x1xf32>
      %cst_26 = arith.constant 0.434294492 : f32
      %33 = vector.broadcast %cst_26 : f32 to vector<4x1xf32>
      %34 = arith.mulf %32, %33 : vector<4x1xf32>
      %35 = math.log %31 : vector<4x1xf32>
      %cst_27 = arith.constant 0.434294492 : f32
      %36 = vector.broadcast %cst_27 : f32 to vector<4x1xf32>
      %37 = arith.mulf %35, %36 : vector<4x1xf32>
      %38 = arith.subf %34, %37 : vector<4x1xf32>
      %cst_28 = arith.constant 5.000000e-01 : f32
      %39 = vector.broadcast %cst_28 : f32 to vector<4x1xf32>
      %40 = arith.mulf %39, %38 : vector<4x1xf32>
      %c0_29 = arith.constant 0 : index
      %c0_30 = arith.constant 0 : index
      %41 = vector.load %arg4[%c0_29, %c0_30] : memref<4x1xf32, #tpu.memory_space<vmem>>, vector<4x1xf32>
      tpu.vector_store %arg4[%c0_29, %c0_30], %40 {strides = array<i32>} : memref<4x1xf32, #tpu.memory_space<vmem>>, vector<4x1xf32>,
    } else {
    }
    return
  }
  func.func @transform_0(%arg0: i32, %arg1: i32) -> (i32, i32) {
    %c0_i32 = arith.constant 0 : i32
    return %arg0, %arg1 : i32, i32
  }
  func.func @transform_1(%arg0: i32, %arg1: i32) -> (i32, i32) {
    %c0_i32 = arith.constant 0 : i32
    return %arg0, %arg1 : i32, i32
  }
  func.func @transform_2(%arg0: i32, %arg1: i32) -> (i32, i32) {
    %c0_i32 = arith.constant 0 : i32
    %c0_i32_0 = arith.constant 0 : i32
    return %arg0, %c0_i32 : i32, i32
  }
}

</mosaic_0001>

<bundles_post_ra>
// kernel: tpu_custom_call.1
= control target key start
LH: loop header
LB: loop body
LE: loop exit
PB: predicated region body
PF: predicated region fallthrough
CT: control target
= control target key end

     0   :  { %7 = vsyncpa [#allocation6], 0  ;;  %s229_s0 = inlined_call_operand.hbm [shape: f32[4,256], index: 0, kind: input, shape index: {}]   ;;  %s230_s1 = inlined_call_operand.hbm [shape: f32[4,256], index: 1, kind: input, shape index: {}]   ;;  %s231_s2 = inlined_call_operand.vmem [shape: f32[4,1], index: 2, kind: output, shape index: {}]  }
   0x1   :  { %s14_s11 = sshll.u32 %s229_s0, 4  ;;  %s15_s11 = int_to_ptr.hbm [resolvable:$true] %s14_s11 }
   0x2   :  { %8 = vsyncpa [#allocation8], 0  ;;  %s195_s12 = smov [#allocation5]   ;;  %s25_s16 = sshll.u32 %s230_s1, 4  ;;  %s26_s16 = int_to_ptr.hbm [resolvable:$true] %s25_s16 }
   0x3   :  { %s16_s13 = sshll.u32 %s195_s12, 4  ;;  %s196_s17 = smov [#allocation7]   ;;  %s17_s13 = int_to_ptr.vmem [resolvable:$true] %s16_s13 }
   0x4   :  { %19 = dma.hbm_to_vmem [thread:$0]  %s15_s11, 128, %s17_s13, [#allocation6]  }
   0x5   :  { %s27_s18 = sshll.u32 %s196_s17, 4  ;;  %s28_s18 = int_to_ptr.vmem [resolvable:$true] %s27_s18 }
   0x6   :  { %30 = dma.hbm_to_vmem [thread:$0]  %s26_s16, 128, %s28_s18, [#allocation8]  }
   0x7   :  { %191 = dma.done.wait [#allocation6], 128  }
   0x8   :  { %192 = vsyncadd [#allocation6], 4294967168 }
   0x9   :  { %193 = dma.done.wait [#allocation8], 128  }
   0xa   :  { %194 = vsyncadd [#allocation8], 4294967168  ;;  %vm43_vm0 = vcmask 3072   ;;  %v197_v0 = vmov 0.0   ;;  %v47_v1 = vld [vmem:[#allocation5] sm:$0xff]  ;;  %v48_v2 = vld [vmem:[#allocation7] sm:$0xff] }
   0xb   :  { %45 = vst.msk [vmem:[#allocation3] sm:$0xf] %vm43_vm0, %v197_v0  ;;  %v50_v3 = vmul.f32 %v48_v2, %v47_v1  ;;  %v67_v4 = vmul.f32 %v48_v2, %v48_v2  ;;  %v82_v7 = vmul.f32 %v47_v1, %v47_v1  ;;  %vm57_vm1 = vcmask 1043456  }
   0xc   :  { %44 = vst.msk [vmem:[#allocation2] sm:$0xf] %vm43_vm0, %v197_v0 }
   0xd   :  { %46 = vst.msk [vmem:[#allocation4] sm:$0xf] %vm43_vm0, %v197_v0 }
   0xe   :  { %52 = vst [vmem:[#allocation1] ss:$2 sm:$0xff] %v50_v3 }
  0x12   :  { %v66_v21 = vld [vmem:[#allocation3] sm:$0xf] }
  0x13   :  { %v49_v24 = vld [vmem:[#allocation2] sm:$0xf] }
  0x14   :  { %v81_v25 = vld [vmem:[#allocation4] sm:$0xf] }
  0x15   :  { %v53_v5 = vld.sshfl [vmem:[#allocation1] sm:$0xff pattern:$0x75316420]  ;;  %v54_v6 = vld.sshfl [vmem:[#allocation1 + $0x8] sm:$0xff pattern:$0x75316420] }
  0x16   :  { %69 = vst [vmem:[#allocation1] ss:$2 sm:$0xff] %v67_v4  ;;  %v58_v13 = vsel %vm57_vm1, %v53_v5, 0.0  ;;  %v59_v14 = vsel %vm57_vm1, %v54_v6, 0.0 }
  0x17   :  { %v60_v15 = vadd.f32 %v59_v14, %v58_v13 }
  0x1d   :  { %v70_v8 = vld.sshfl [vmem:[#allocation1] sm:$0xff pattern:$0x75316420]  ;;  %v71_v9 = vld.sshfl [vmem:[#allocation1 + $0x8] sm:$0xff pattern:$0x75316420] }
  0x1e   :  { %v74_v10 = vsel %vm57_vm1, %v70_v8, 0.0  ;;  %v75_v11 = vsel %vm57_vm1, %v71_v9, 0.0  ;;  %84 = vst [vmem:[#allocation1] ss:$2 sm:$0xff] %v82_v7 }
  0x1f   :  { %v76_v12 = vadd.f32 %v75_v11, %v74_v10 }
  0x21   :  { %77 = vadd.xlane.f32.xlu0 %v76_v12 }
  0x25   :  { %v85_v16 = vld.sshfl [vmem:[#allocation1] sm:$0xff pattern:$0x75316420]  ;;  %v86_v17 = vld.sshfl [vmem:[#allocation1 + $0x8] sm:$0xff pattern:$0x75316420] }
  0x26   :  { %v89_v18 = vsel %vm57_vm1, %v85_v16, 0.0  ;;  %v90_v19 = vsel %vm57_vm1, %v86_v17, 0.0 }
  0x27   :  { %v91_v20 = vadd.f32 %v90_v19, %v89_v18 }
  0x29   :  { %61 = vadd.xlane.f32.xlu0 %v60_v15  ;;  %92 = vadd.xlane.f32.xlu1 %v91_v20 }
  0x94   :  { %v78_v22 = vpop.xlane.xlu0 %77 }
  0x95   :  { %v79_v23 = vadd.f32 %v78_v22, %v66_v21 }
  0x97   :  { %80 = vst.msk [vmem:[#allocation3] sm:$0xf] %vm43_vm0, %v79_v23 }
  0x9c   :  { %v62_v26 = vpop.xlane.xlu0 %61  ;;  %v93_v27 = vpop.xlane.xlu1 %92 }
  0x9d   :  { %v63_v28 = vadd.f32 %v62_v26, %v49_v24  ;;  %v94_v29 = vadd.f32 %v93_v27, %v81_v25 }
  0x9e   :  { %v101_v30 = vld [vmem:[#allocation3] sm:$0xf] }
  0x9f   :  { %137 = vrcp.f32 %v101_v30  ;;  %65 = vst.msk [vmem:[#allocation2] sm:$0xf] %vm43_vm0, %v63_v28  ;;  %v113_v34 = vand.u32 2147483648, %v101_v30  ;;  %v111_v37 = vand.u32 2147483647, %v101_v30  ;;  %vm107_vm3 = vweird.f32 %v101_v30 }
  0xa0   :  { %95 = vst.msk [vmem:[#allocation4] sm:$0xf] %vm43_vm0, %v94_v29 }
  0xa1   :  { %v114_v40 = vor.u32 1.1754944e-38, %v113_v34  ;;  %vm112_vm5 = vcmp.eq.f32.partialorder %v111_v37, 8.507059e+37 }
  0xa5   :  { %v138_v31 = vpop.eup %137 }
  0xa6   :  { %v103_v32 = vmul.f32 %v138_v31, %v101_v30  ;;  %v99_v35 = vld [vmem:[#allocation2] sm:$0xf]  ;;  %vm108_vm2 = vweird.f32 %v138_v31 }
  0xa7   :  { %v100_v38 = vmul.f32 %v99_v35, %v99_v35  ;;  %vm109_vm4 = vmor %vm107_vm3, %vm108_vm2  ;;  %v117_v43 = vld [vmem:[#allocation4] sm:$0xf] }
  0xa8   :  { %v104_v33 = vsub.f32 1.0, %v103_v32 }
  0xaa   :  { %v105_v36 = vmul.f32 %v138_v31, %v104_v33 }
  0xac   :  { %v106_v39 = vadd.f32 %v138_v31, %v105_v36 }
  0xae   :  { %v110_v41 = vsel %vm109_vm4, %v138_v31, %v106_v39 }
  0xaf   :  { %v115_v42 = vsel %vm112_vm5, %v114_v40, %v110_v41 }
  0xb0   :  { %v116_v44 = vmul.f32 %v115_v42, %v100_v38 }
  0xb2   :  { %139 = vlog2.f32 %v116_v44  ;;  %v118_v45 = vsub.f32 %v117_v43, %v116_v44 }
  0xb4   :  { %141 = vlog2.f32 %v118_v45 }
  0xb8   :  { %v140_v46 = vpop.eup %139 }
  0xb9   :  { %v120_v47 = vmul.f32 0.6931472, %v140_v46 }
  0xba   :  { %v142_v48 = vpop.eup %141 }
  0xbb   :  { %v123_v49 = vmul.f32 0.6931472, %v142_v48  ;;  %v121_v50 = vmul.f32 0.4342945, %v120_v47 }
  0xbd   :  { %v124_v51 = vmul.f32 0.4342945, %v123_v49 }
  0xbf   :  { %v125_v52 = vsub.f32 %v121_v50, %v124_v51 }
  0xc1   :  { %v126_v53 = vmul.f32 0.5, %v125_v52 }
  0xc3   :  { %127 = vst.msk [vmem:[%s231_s2] sm:$0xf] %vm43_vm0, %v126_v53 }
  0xc4   :  { %132 = vsyncpa [#allocation6], 1 }
  0xc5   :  { %133 = vsyncpa [#allocation8], 1 }

</bundles_post_ra>
